<compile_context>
chip_gen: v5e
topology: v5e:2x2
jax: 0.10.0
libtpu: 0.0.40
codegen_flags: <defaults>
</compile_context>

<pallas_src>
import functools

import jax
import jax.numpy as jnp
import numpy as np
from jax import lax
from jax.experimental import pallas as pl
from jax.experimental.pallas import tpu as pltpu


def _round_up(x, m):
    return ((x + m - 1) // m) * m


def _sublane(dtype):
    # Native sublane packing: 8 rows for 4-byte, 16 for 2-byte, 32 for 1-byte.
    return {4: 8, 2: 16, 1: 32}.get(jnp.dtype(dtype).itemsize, 8)


# Contract the last dim of both operands: x[M,K] . w[C,K] -> [M,C] (trans-B),
# so the pre-packed [C_pad, nf] weight is used as-is (no transpose, no 128-lane
# padding of the tiny class dimension).
_TRANS_B_DIMS = (((1,), (1,)), ((), ()))


def _matmul_tb(a, b):
    return lax.dot_general(a, b, _TRANS_B_DIMS, preferred_element_type=jnp.float32)


# ------------------------------- kernels -------------------------------------


def _resident_kernel(x_ref, w_ref, o_ref):
    # Weight resident in VMEM (constant index_map -> single DMA for the run).
    # x_ref: [TM, nf]   w_ref: [C_pad, nf]   o_ref: [TM, C_pad] fp32
    o_ref[...] = _matmul_tb(x_ref[...], w_ref[...])


def _split_k_kernel(x_ref, w_ref, o_ref):
    # One K-half partial product (tiny-batch path: each v7x core gets a half).
    # x_ref: [B, nf//2]  w_ref: [C_pad, nf//2]  o_ref: [1, B, C_pad] fp32
    o_ref[0] = _matmul_tb(x_ref[...], w_ref[...])


def _ktiled_kernel(x_ref, w_ref, o_ref, acc_ref):
    # Fallback for weights too large to keep resident: reduction axis last,
    # fp32 accumulator zeroed at k==0 and stored at the final k step.
    k = pl.program_id(1)

    @pl.when(k == 0)
    def _():
        acc_ref[...] = jnp.zeros_like(acc_ref)

    acc_ref[...] += _matmul_tb(x_ref[...], w_ref[...])

    @pl.when(k == pl.num_programs(1) - 1)
    def _():
        o_ref[...] = acc_ref[...]


# ------------------------------- wrapper --------------------------------------


def pack_flatten_head_weight(weight, compute_dtype=None):
    """One-time weight pre-pack (do at parameter-setup time, not per call).

    weight: [num_classes, nf] (nn.Linear layout) -> [C_pad, nf] in
    `compute_dtype` (default: weight.dtype), where num_classes is padded only
    up to the dtype's sublane multiple (8 fp32 / 16 bf16) -- NOT to 128 lanes.
    Passing compute_dtype=jnp.bfloat16 halves the HBM streams (fp32 accumulate
    is kept inside the kernel).
    """
    dtype = jnp.dtype(compute_dtype) if compute_dtype is not None else weight.dtype
    c, _ = weight.shape
    c_pad = _round_up(c, _sublane(dtype))
    w = weight.astype(dtype)
    if c_pad != c:
        w = jnp.pad(w, ((0, c_pad - c), (0, 0)))
    return w


def flatten_head(
    x,
    w_packed,
    bias,
    *,
    tk_max=8192,
    vmem_cap_bytes=40 << 20,          # safe on v7x (64 MiB VMEM) and v5e/v6e
    resident_budget_bytes=36 << 20,   # weight + full-K row tile kept resident
    split_k_small_batch=True,
):
    """FlattenHead forward:  flatten(x, start_dim=-3) @ W.T + b.

    x:        [B, n_vars, d_model, patch_num]
    w_packed: [C_pad, nf] from pack_flatten_head_weight()
    bias:     [num_classes]
    returns:  [B, num_classes] float32
    """
    B = x.shape[0]
    nf = x.shape[1] * x.shape[2] * x.shape[3]
    c_pad, nf_w = w_packed.shape
    if nf_w != nf:
        raise ValueError("packed weight feature dim does not match x")
    num_classes = bias.shape[0]

    x_flat = x.reshape(B, nf)                     # contiguous reshape: no copy
    if x_flat.dtype != w_packed.dtype:
        x_flat = x_flat.astype(w_packed.dtype)    # e.g. bf16 compute path
    itemsize = jnp.dtype(w_packed.dtype).itemsize
    sub = _sublane(w_packed.dtype)

    # Row tiling: one full-extent tile for small B (no row padding at all);
    # for B >= 16 use >=2 row tiles so both v7x TensorCores get work, sized to
    # avoid pad-to-128 blowups (e.g. B=130 -> TM=72, B_pad=144, not 256).
    if B < 16:
        TM, B_pad = B, B
    else:
        n_row = max(2, pl.cdiv(B, 128))
        TM = min(128, _round_up(pl.cdiv(B, n_row), sub))
        B_pad = _round_up(B, TM)
    n_row = B_pad // TM

    x_p = x_flat if B_pad == B else jnp.pad(x_flat, ((0, B_pad - B), (0, 0)))

    out_shape = jax.ShapeDtypeStruct((B_pad, c_pad), jnp.float32)
    # Pipeline double-buffers each operand block plus the fp32 output block.
    resident_bytes = 2 * (TM * nf + c_pad * nf) * itemsize + 2 * TM * c_pad * 4

    if resident_bytes <= resident_budget_bytes:
        if split_k_small_batch and n_row == 1 and nf >= 512 and nf % 256 == 0:
            # Tiny batch: split the reduction into two parallel halves so both
            # v7x TensorCores work; partials are summed in the wrapper.
            kh = nf // 2
            cost = pl.CostEstimate(
                flops=2 * B_pad * nf * c_pad,
                transcendentals=0,
                bytes_accessed=(B_pad * nf + c_pad * nf) * itemsize
                + 2 * B_pad * c_pad * 4,
            )
            out_p = pl.pallas_call(
                _split_k_kernel,
                out_shape=jax.ShapeDtypeStruct((2, B_pad, c_pad), jnp.float32),
                grid_spec=pltpu.PrefetchScalarGridSpec(
                    num_scalar_prefetch=0,
                    grid=(2,),
                    in_specs=[
                        pl.BlockSpec((B_pad, kh), lambda j: (0, j)),
                        pl.BlockSpec((c_pad, kh), lambda j: (0, j)),
                    ],
                    out_specs=pl.BlockSpec((1, B_pad, c_pad), lambda j: (j, 0, 0)),
                ),
                compiler_params=pltpu.CompilerParams(
                    dimension_semantics=("parallel",),
                    vmem_limit_bytes=vmem_cap_bytes,
                ),
                cost_estimate=cost,
            )(x_p, w_packed)
            out = out_p[0] + out_p[1]
        else:
            # Resident-weight path: weight DMA'd once, no accumulator scratch,
            # no k==0 / k==last branches.
            cost = pl.CostEstimate(
                flops=2 * B_pad * nf * c_pad,
                transcendentals=0,
                bytes_accessed=(B_pad * nf + c_pad * nf) * itemsize
                + B_pad * c_pad * 4,
            )
            out = pl.pallas_call(
                _resident_kernel,
                out_shape=out_shape,
                grid_spec=pltpu.PrefetchScalarGridSpec(
                    num_scalar_prefetch=0,
                    grid=(n_row,),
                    in_specs=[
                        pl.BlockSpec((TM, nf), lambda i: (i, 0)),
                        pl.BlockSpec((c_pad, nf), lambda i: (0, 0)),
                    ],
                    out_specs=pl.BlockSpec((TM, c_pad), lambda i: (i, 0)),
                ),
                compiler_params=pltpu.CompilerParams(
                    dimension_semantics=("parallel",),
                    vmem_limit_bytes=vmem_cap_bytes,
                ),
                cost_estimate=cost,
            )(x_p, w_packed)
    else:
        # K-tiled fallback (weight too large for VMEM).  Prefer a TK that
        # divides nf exactly so no padded copy of x / w is materialized.
        tk_cap = max(128, min(_round_up(tk_max, 128), _round_up(nf, 128)))
        TK = 0
        if nf % 128 == 0:
            for t in range(tk_cap, 0, -128):
                if nf % t == 0:
                    TK = t
                    break
        if TK == 0:
            TK = tk_cap
        nf_pad = _round_up(nf, TK)
        w_p = w_packed
        if nf_pad != nf:
            # Rare: nf not a multiple of 128 AND weight exceeds the VMEM budget.
            x_p = jnp.pad(x_p, ((0, 0), (0, nf_pad - nf)))
            w_p = jnp.pad(w_packed, ((0, 0), (0, nf_pad - nf)))
        n_k = nf_pad // TK
        cost = pl.CostEstimate(
            flops=2 * B_pad * nf_pad * c_pad,
            transcendentals=0,
            bytes_accessed=(B_pad * nf_pad + n_row * c_pad * nf_pad) * itemsize
            + B_pad * c_pad * 4,
        )
        out = pl.pallas_call(
            _ktiled_kernel,
            out_shape=out_shape,
            grid_spec=pltpu.PrefetchScalarGridSpec(
                num_scalar_prefetch=0,
                grid=(n_row, n_k),
                in_specs=[
                    pl.BlockSpec((TM, TK), lambda i, k: (i, k)),
                    pl.BlockSpec((c_pad, TK), lambda i, k: (0, k)),
                ],
                out_specs=pl.BlockSpec((TM, c_pad), lambda i, k: (i, 0)),
                scratch_shapes=[pltpu.VMEM((TM, c_pad), jnp.float32)],
            ),
            compiler_params=pltpu.CompilerParams(
                dimension_semantics=("parallel", "arbitrary"),
                vmem_limit_bytes=vmem_cap_bytes,
            ),
            cost_estimate=cost,
        )(x_p, w_p)

    # Bias added in the tiny, fusing epilogue instead of a kernel input stream.
    return out[:B, :num_classes] + bias.astype(jnp.float32)


if __name__ == "__main__":
    key = jax.random.PRNGKey(0)

    def make_case(k, B, n_vars, d_model, patch_num, num_classes):
        nf = n_vars * d_model * patch_num
        kx, kw, kb = jax.random.split(k, 3)
        x = jax.random.normal(kx, (B, n_vars, d_model, patch_num), jnp.float32)
        bound = 1.0 / (nf ** 0.5)   # nn.Linear-style uniform init
        w = jax.random.uniform(kw, (num_classes, nf), jnp.float32, -bound, bound)
        b = jax.random.uniform(kb, (num_classes,), jnp.float32, -bound, bound)
        return x, w, b

    def reference(x, w, b):
        x64 = np.asarray(x, np.float64).reshape(x.shape[0], -1)
        return x64 @ np.asarray(w, np.float64).T + np.asarray(b, np.float64)

    k1, k2, k3 = jax.random.split(key, 3)
    jit_head = jax.jit(flatten_head)

    # Case 1: module-default small shapes -> resident-weight path.
    x, w, b = make_case(k1, B=4, n_vars=4, d_model=8, patch_num=4, num_classes=8)
    y = jit_head(x, pack_flatten_head_weight(w), b)   # weight pre-packed once
    jax.block_until_ready(y)
    assert y.shape == (4, 8)
    assert np.allclose(np.asarray(y, np.float64), reference(x, w, b),
                       atol=5e-3, rtol=5e-3)

    # Case 2: tiny batch, larger nf -> parallel split-K path (both v7x cores).
    x, w, b = make_case(k2, B=4, n_vars=4, d_model=8, patch_num=16, num_classes=8)
    y = jit_head(x, pack_flatten_head_weight(w), b)
    jax.block_until_ready(y)
    assert np.allclose(np.asarray(y, np.float64), reference(x, w, b),
                       atol=5e-3, rtol=5e-3)

    # Case 3: multi-row-tile batch, bf16 compute, forced K-tiled fallback.
    x, w, b = make_case(k3, B=20, n_vars=4, d_model=16, patch_num=8, num_classes=10)
    w_bf16 = pack_flatten_head_weight(w, compute_dtype=jnp.bfloat16)
    forced = jax.jit(functools.partial(flatten_head, tk_max=256,
                                       resident_budget_bytes=0))
    y = forced(x, w_bf16, b)
    jax.block_until_ready(y)
    assert np.allclose(np.asarray(y, np.float64), reference(x, w, b),
                       atol=5e-2, rtol=5e-2)

    print("KERNEL_OK")
</pallas_src>

<mosaic_0001>
module attributes {stable_mosaic.version = 11 : i64} {
  func.func @_resident_kernel(%arg0: i32, %arg1: memref<4x128xf32, #tpu.memory_space<vmem>>, %arg2: memref<8x128xf32, #tpu.memory_space<vmem>>, %arg3: memref<4x8xf32, #tpu.memory_space<vmem>>) attributes {dimension_semantics = [#tpu.dimension_semantics<parallel>], iteration_bounds = array<i64: 1>, scalar_prefetch = 0 : i64, scratch_operands = 0 : i64, tpu.core_type = #tpu.core_type<tc>, window_params = [{transform_indices = @transform_0, window_bounds = array<i64: 4, 128>}, {pipeline_mode = #tpu.pipeline_mode<synchronous>, transform_indices = @transform_1, window_bounds = array<i64: 8, 128>}, {transform_indices = @transform_2, window_bounds = array<i64: 4, 8>}]} {
    %c0 = arith.constant 0 : index
    %c0_0 = arith.constant 0 : index
    %0 = vector.load %arg1[%c0, %c0_0] : memref<4x128xf32, #tpu.memory_space<vmem>>, vector<4x128xf32>
    %c0_1 = arith.constant 0 : index
    %c0_2 = arith.constant 0 : index
    %1 = vector.load %arg2[%c0_1, %c0_2] : memref<8x128xf32, #tpu.memory_space<vmem>>, vector<8x128xf32>
    %cst = arith.constant dense<0.000000e+00> : vector<4x8xf32>
    %2 = tpu.matmul %0, %1, %cst {dimension_numbers = #tpu.dot_dimension_numbers<[1], [1], [0], [0], [0, 0, 1, 0], [], []>} : vector<4x128xf32>, vector<8x128xf32>, vector<4x8xf32> -> vector<4x8xf32>
    %c0_3 = arith.constant 0 : index
    %c0_4 = arith.constant 0 : index
    %3 = vector.load %arg3[%c0_3, %c0_4] : memref<4x8xf32, #tpu.memory_space<vmem>>, vector<4x8xf32>
    tpu.vector_store %arg3[%c0_3, %c0_4], %2 {strides = array<i32>} : memref<4x8xf32, #tpu.memory_space<vmem>>, vector<4x8xf32>,
    return
  }
  func.func @transform_0(%arg0: i32) -> (i32, i32) {
    %c0_i32 = arith.constant 0 : i32
    %c0_i32_0 = arith.constant 0 : i32
    return %arg0, %c0_i32 : i32, i32
  }
  func.func @transform_1(%arg0: i32) -> (i32, i32) {
    %c0_i32 = arith.constant 0 : i32
    %c0_i32_0 = arith.constant 0 : i32
    %c0_i32_1 = arith.constant 0 : i32
    return %c0_i32, %c0_i32_0 : i32, i32
  }
  func.func @transform_2(%arg0: i32) -> (i32, i32) {
    %c0_i32 = arith.constant 0 : i32
    %c0_i32_0 = arith.constant 0 : i32
    return %arg0, %c0_i32 : i32, i32
  }
}

</mosaic_0001>

<bundles_post_ra>
// kernel: flatten_head.1
= control target key start
LH: loop header
LB: loop body
LE: loop exit
PB: predicated region body
PF: predicated region fallthrough
CT: control target
= control target key end

     0   :  { %vm33_vm0 = vcmask 60416   ;;  %s63_s1 = inlined_call_operand.vmem [shape: f32[8,128], index: 1, kind: input, shape index: {}]   ;;  %s64_s0 = inlined_call_operand.vmem [shape: f32[4,128], index: 0, kind: input, shape index: {}]   ;;  %s65_s2 = inlined_call_operand.vmem [shape: f32[4,8], index: 2, kind: output, shape index: {}]  }
   0x1   :  { %v12_v0 = vld [vmem:[%s63_s1] sm:$0xff] }
   0x2   :  { %28 = vmatpush.xpose.msra.mxu0 %v12_v0  ;;  %v11_v1 = vld [vmem:[%s64_s0] sm:$0xf] }
   0x5   :  { %29 = vmatmul.f32.vlgmr.msra.gmra.mxu0 %v11_v1 }
  0x82   :  { %v30_v2 = vpop.f32.mrf.mxu0 }
  0x83   :  { %34 = vst.msk [vmem:[%s65_s2] sm:$0xf] %vm33_vm0, %v30_v2 }

</bundles_post_ra>
